<compile_context>
chip_gen: v6e
topology: v6e:2x2x1
jax: 0.10.0
libtpu: 0.0.40
codegen_flags: <defaults>
</compile_context>

<pallas_src>
import functools

import jax
import jax.numpy as jnp
from jax.experimental import pallas as pl
from jax.experimental.pallas import tpu as pltpu

DIM = 32
HEADS = 2
HEAD_DIM = DIM // HEADS
EPS = 1e-5  # nn.LayerNorm default


def _layernorm(x, gamma, beta):
    mu = jnp.mean(x, axis=-1, keepdims=True)
    var = jnp.mean(jnp.square(x - mu), axis=-1, keepdims=True)
    return (x - mu) * jax.lax.rsqrt(var + EPS) * gamma + beta


def _transformer_kernel(x_ref, params_ref, wqk_ref, wv_ref, wfc_ref,
                        o_ref, *, tb, n):
    """One batch tile (tb, n, DIM) per grid step, flattened to (tb*n, DIM)."""
    rows = tb * n
    x = x_ref[...].astype(jnp.float32).reshape(rows, DIM)        # (R, D)

    params = params_ref[...].astype(jnp.float32)                 # (8, D)
    g1, b1 = params[0], params[1]
    g2, b2 = params[2], params[3]
    bfc = params[4]

    # ---- block 1: relu(attention(norm1(x)) + x) ----
    xn = _layernorm(x, g1, b1)                                   # (R, D)

    acc = x                                                      # residual pre-loaded
    for h in range(HEADS):                                       # unrolled at trace time
        wq = wqk_ref[h].astype(jnp.float32)                      # (D, HEAD_DIM), scale folded
        wk = wqk_ref[HEADS + h].astype(jnp.float32)              # (D, HEAD_DIM)
        wv = wv_ref[h].astype(jnp.float32)                       # (D, D), only head-h cols nonzero

        qh = jnp.dot(xn, wq, preferred_element_type=jnp.float32) # (R, HEAD_DIM)
        kh = jnp.dot(xn, wk, preferred_element_type=jnp.float32) # (R, HEAD_DIM)
        vh = jnp.dot(xn, wv, preferred_element_type=jnp.float32) # (R, D) slot-placed

        qh = qh.reshape(tb, n, HEAD_DIM)
        kh = kh.reshape(tb, n, HEAD_DIM)
        vh = vh.reshape(tb, n, DIM)

        # scores: contract on head_dim (no explicit transpose of kh)
        s = jnp.einsum("bnd,bmd->bnm", qh, kh,
                       preferred_element_type=jnp.float32)       # (tb, n, n)
        m = jnp.max(s, axis=-1, keepdims=True)
        e = jnp.exp(s - m)
        denom = jnp.sum(e, axis=-1, keepdims=True)
        attn = e * pl.reciprocal(denom, approx=True)             # EUP recip

        # attn @ v lands directly in this head's feature columns (others are 0)
        oh = jnp.einsum("bnm,bmd->bnd", attn, vh,
                        preferred_element_type=jnp.float32)      # (tb, n, D)
        acc = acc + oh.reshape(rows, DIM)

    h1 = jnp.maximum(acc, 0.0)                                   # relu(attn + residual)

    # ---- block 2: relu(fc1(norm2(h1)) + h1) ----
    hn = _layernorm(h1, g2, b2)
    fc = jnp.dot(hn, wfc_ref[...].astype(jnp.float32),
                 preferred_element_type=jnp.float32) + bfc
    out = jnp.maximum(fc + h1, 0.0)

    o_ref[...] = out.reshape(tb, n, DIM).astype(o_ref.dtype)


def _pick_batch_tile(batch, seq):
    """Batch elements per grid step: fill the MXU M-dim (>=128 rows) when possible,
    but keep >=2 grid steps (dual TensorCore) if that still leaves big tiles."""
    tb = min(batch, max(1, -(-128 // seq)))
    if batch // tb < 2 and batch >= 2 and (batch // 2) * seq >= 128:
        tb = batch // 2
    while batch % tb:          # avoid partial blocks
        tb -= 1
    return tb


@jax.jit
def transformer_forward(x, g1, b1, wqkv_t, wfc_t, bfc, g2, b2):
    B, N, D = x.shape
    assert D == DIM
    tb = _pick_batch_tile(B, N)

    scale = DIM ** (-0.5)                                        # torch: dim ** -0.5
    wq, wk, wv = wqkv_t[:, :D], wqkv_t[:, D:2 * D], wqkv_t[:, 2 * D:]

    def split_heads(w):  # (D, D) -> (HEADS, D, HEAD_DIM)
        return w.reshape(D, HEADS, HEAD_DIM).transpose(1, 0, 2)

    # Q (with the softmax scale folded in) and K per-head projections.
    wqk = jnp.concatenate(
        [split_heads(wq * scale), split_heads(wk)], axis=0
    ).astype(jnp.float32)                                        # (2*HEADS, D, HEAD_DIM)

    # V projection with the head->feature-slot placement folded into the weight:
    # wv_slot[h][:, h*HEAD_DIM:(h+1)*HEAD_DIM] = Wv columns of head h, zero elsewhere.
    wv_slot = jnp.zeros((HEADS, D, D), jnp.float32)
    for h in range(HEADS):
        lo, hi = h * HEAD_DIM, (h + 1) * HEAD_DIM
        wv_slot = wv_slot.at[h, :, lo:hi].set(wv[:, lo:hi])

    # Pack the five (D,) parameter vectors into a single (8, D) block.
    params = jnp.zeros((8, D), jnp.float32)
    params = (params.at[0].set(g1).at[1].set(b1)
                    .at[2].set(g2).at[3].set(b2).at[4].set(bfc))

    rows = B * N
    flops = (2 * rows * D * (2 * HEAD_DIM) * HEADS     # q, k projections
             + 2 * rows * D * D * HEADS                # slot-placed v projections
             + 2 * B * HEADS * N * N * HEAD_DIM        # scores
             + 2 * B * HEADS * N * N * D               # attn @ v
             + 2 * rows * D * D)                       # fc1
    bytes_accessed = 4 * (2 * rows * D + wqk.size + wv_slot.size
                          + wfc_t.size + params.size)
    cost = pl.CostEstimate(flops=flops,
                           transcendentals=B * HEADS * N * N,
                           bytes_accessed=bytes_accessed)

    kernel = functools.partial(_transformer_kernel, tb=tb, n=N)

    return pl.pallas_call(
        kernel,
        out_shape=jax.ShapeDtypeStruct((B, N, D), x.dtype),
        grid=(B // tb,),
        in_specs=[
            pl.BlockSpec((tb, N, D), lambda i: (i, 0, 0)),                 # x tile
            pl.BlockSpec((8, D), lambda i: (0, 0)),                        # packed params
            pl.BlockSpec((2 * HEADS, D, HEAD_DIM), lambda i: (0, 0, 0)),   # per-head q/k W
            pl.BlockSpec((HEADS, D, D), lambda i: (0, 0, 0)),              # slot-placed v W
            pl.BlockSpec((D, D), lambda i: (0, 0)),                        # fc1 W^T
        ],
        out_specs=pl.BlockSpec((tb, N, D), lambda i: (i, 0, 0)),
        compiler_params=pltpu.CompilerParams(
            dimension_semantics=("parallel",)),
        cost_estimate=cost,
    )(x, params, wqk, wv_slot, wfc_t)


def reference_forward(x, g1, b1, wqkv_t, wfc_t, bfc, g2, b2):
    """Pure-JAX reference mirroring the PyTorch module."""
    def ln(t, g, be):
        mu = jnp.mean(t, -1, keepdims=True)
        var = jnp.mean((t - mu) ** 2, -1, keepdims=True)
        return (t - mu) / jnp.sqrt(var + EPS) * g + be

    xn = ln(x, g1, b1)
    qkv = xn @ wqkv_t                                    # (B, N, 3D)
    q, k, v = jnp.split(qkv, 3, axis=-1)

    def to_heads(t):
        B, N, _ = t.shape
        return t.reshape(B, N, HEADS, HEAD_DIM).transpose(0, 2, 1, 3)

    q, k, v = map(to_heads, (q, k, v))
    dots = jnp.einsum("bhid,bhjd->bhij", q, k) * (DIM ** -0.5)
    attn = jax.nn.softmax(dots, axis=-1)
    out = jnp.einsum("bhij,bhjd->bhid", attn, v)
    out = out.transpose(0, 2, 1, 3).reshape(x.shape)
    h1 = jax.nn.relu(out + x)
    hn = ln(h1, g2, b2)
    return jax.nn.relu(hn @ wfc_t + bfc + h1)


if __name__ == "__main__":
    B, N, D = 2, 8, DIM
    key = jax.random.PRNGKey(0)
    kx, kqkv, kfc, kbfc, kg1, kb1, kg2, kb2 = jax.random.split(key, 8)

    x = jax.random.normal(kx, (B, N, D), dtype=jnp.float32)

    # Deterministic synthetic parameters (shapes from the module's __init__).
    # nn.Linear weights are (out, in) in torch; we store the transpose (in, out).
    wqkv_t = jax.random.normal(kqkv, (D, 3 * D), jnp.float32) * (1.0 / D ** 0.5)
    wfc_t = jax.random.normal(kfc, (D, D), jnp.float32) * (1.0 / D ** 0.5)
    bfc = jax.random.normal(kbfc, (D,), jnp.float32) * 0.1
    g1 = 1.0 + 0.1 * jax.random.normal(kg1, (D,), jnp.float32)
    b1 = 0.1 * jax.random.normal(kb1, (D,), jnp.float32)
    g2 = 1.0 + 0.1 * jax.random.normal(kg2, (D,), jnp.float32)
    b2 = 0.1 * jax.random.normal(kb2, (D,), jnp.float32)

    out = transformer_forward(x, g1, b1, wqkv_t, wfc_t, bfc, g2, b2)
    out = jax.block_until_ready(out)

    ref = reference_forward(x, g1, b1, wqkv_t, wfc_t, bfc, g2, b2)
    assert out.shape == (B, N, D)
    # tolerance accounts for the approximate (EUP) reciprocal in the softmax
    assert jnp.allclose(out, ref, atol=1e-2, rtol=1e-2), "mismatch vs reference"

    print("KERNEL_OK")
</pallas_src>

<mosaic_0001>
module attributes {stable_mosaic.version = 11 : i64} {
  func.func @_transformer_kernel(%arg0: i32, %arg1: memref<2x8x32xf32, #tpu.memory_space<vmem>>, %arg2: memref<8x32xf32, #tpu.memory_space<vmem>>, %arg3: memref<4x32x16xf32, #tpu.memory_space<vmem>>, %arg4: memref<2x32x32xf32, #tpu.memory_space<vmem>>, %arg5: memref<32x32xf32, #tpu.memory_space<vmem>>, %arg6: memref<2x8x32xf32, #tpu.memory_space<vmem>>) attributes {dimension_semantics = [#tpu.dimension_semantics<parallel>], iteration_bounds = array<i64: 1>, scalar_prefetch = 0 : i64, scratch_operands = 0 : i64, tpu.core_type = #tpu.core_type<tc>, window_params = [{transform_indices = @transform_0, window_bounds = array<i64: 2, 8, 32>}, {pipeline_mode = #tpu.pipeline_mode<synchronous>, transform_indices = @transform_1, window_bounds = array<i64: 8, 32>}, {pipeline_mode = #tpu.pipeline_mode<synchronous>, transform_indices = @transform_2, window_bounds = array<i64: 4, 32, 16>}, {pipeline_mode = #tpu.pipeline_mode<synchronous>, transform_indices = @transform_3, window_bounds = array<i64: 2, 32, 32>}, {pipeline_mode = #tpu.pipeline_mode<synchronous>, transform_indices = @transform_4, window_bounds = array<i64: 32, 32>}, {transform_indices = @transform_5, window_bounds = array<i64: 2, 8, 32>}]} {
    %c0 = arith.constant 0 : index
    %c0_0 = arith.constant 0 : index
    %c0_1 = arith.constant 0 : index
    %0 = vector.load %arg1[%c0, %c0_0, %c0_1] : memref<2x8x32xf32, #tpu.memory_space<vmem>>, vector<2x8x32xf32>
    %1 = vector.shape_cast %0 : vector<2x8x32xf32> to vector<16x32xf32>
    %c0_2 = arith.constant 0 : index
    %c0_3 = arith.constant 0 : index
    %2 = vector.load %arg2[%c0_2, %c0_3] : memref<8x32xf32, #tpu.memory_space<vmem>>, vector<8x32xf32>
    %3 = vector.extract_strided_slice %2 {offsets = [0, 0], sizes = [1, 32], strides = [1, 1]} : vector<8x32xf32> to vector<1x32xf32>
    %4 = vector.shape_cast %3 : vector<1x32xf32> to vector<32xf32>
    %5 = vector.extract_strided_slice %2 {offsets = [1, 0], sizes = [1, 32], strides = [1, 1]} : vector<8x32xf32> to vector<1x32xf32>
    %6 = vector.shape_cast %5 : vector<1x32xf32> to vector<32xf32>
    %7 = vector.extract_strided_slice %2 {offsets = [2, 0], sizes = [1, 32], strides = [1, 1]} : vector<8x32xf32> to vector<1x32xf32>
    %8 = vector.shape_cast %7 : vector<1x32xf32> to vector<32xf32>
    %9 = vector.extract_strided_slice %2 {offsets = [3, 0], sizes = [1, 32], strides = [1, 1]} : vector<8x32xf32> to vector<1x32xf32>
    %10 = vector.shape_cast %9 : vector<1x32xf32> to vector<32xf32>
    %11 = vector.extract_strided_slice %2 {offsets = [4, 0], sizes = [1, 32], strides = [1, 1]} : vector<8x32xf32> to vector<1x32xf32>
    %12 = vector.shape_cast %11 : vector<1x32xf32> to vector<32xf32>
    %cst = arith.constant dense<0.000000e+00> : vector<16xf32>
    %13 = vector.multi_reduction <add>, %1, %cst [1] : vector<16x32xf32> to vector<16xf32>
    %14 = vector.shape_cast %13 : vector<16xf32> to vector<16x1xf32>
    %cst_4 = arith.constant 3.200000e+01 : f32
    %15 = vector.broadcast %cst_4 : f32 to vector<16x1xf32>
    %16 = arith.divf %14, %15 : vector<16x1xf32>
    %17 = vector.broadcast %16 : vector<16x1xf32> to vector<16x32xf32>
    %18 = arith.subf %1, %17 : vector<16x32xf32>
    %19 = arith.mulf %18, %18 : vector<16x32xf32>
    %cst_5 = arith.constant dense<0.000000e+00> : vector<16xf32>
    %20 = vector.multi_reduction <add>, %19, %cst_5 [1] : vector<16x32xf32> to vector<16xf32>
    %21 = vector.shape_cast %20 : vector<16xf32> to vector<16x1xf32>
    %cst_6 = arith.constant 3.200000e+01 : f32
    %22 = vector.broadcast %cst_6 : f32 to vector<16x1xf32>
    %23 = arith.divf %21, %22 : vector<16x1xf32>
    %24 = vector.broadcast %16 : vector<16x1xf32> to vector<16x32xf32>
    %25 = arith.subf %1, %24 : vector<16x32xf32>
    %cst_7 = arith.constant 9.99999974E-6 : f32
    %26 = vector.broadcast %cst_7 : f32 to vector<16x1xf32>
    %27 = arith.addf %23, %26 : vector<16x1xf32>
    %28 = math.rsqrt %27 : vector<16x1xf32>
    %29 = vector.broadcast %28 : vector<16x1xf32> to vector<16x32xf32>
    %30 = arith.mulf %25, %29 : vector<16x32xf32>
    %31 = vector.shape_cast %4 : vector<32xf32> to vector<1x32xf32>
    %32 = vector.broadcast %31 : vector<1x32xf32> to vector<16x32xf32>
    %33 = arith.mulf %30, %32 : vector<16x32xf32>
    %34 = vector.shape_cast %6 : vector<32xf32> to vector<1x32xf32>
    %35 = vector.broadcast %34 : vector<1x32xf32> to vector<16x32xf32>
    %36 = arith.addf %33, %35 : vector<16x32xf32>
    %c0_8 = arith.constant 0 : index
    %c0_9 = arith.constant 0 : index
    %c0_10 = arith.constant 0 : index
    %37 = vector.load %arg3[%c0_8, %c0_9, %c0_10] : memref<4x32x16xf32, #tpu.memory_space<vmem>>, vector<1x32x16xf32>
    %38 = vector.shape_cast %37 : vector<1x32x16xf32> to vector<32x16xf32>
    %c2 = arith.constant 2 : index
    %c0_11 = arith.constant 0 : index
    %c0_12 = arith.constant 0 : index
    %39 = vector.load %arg3[%c2, %c0_11, %c0_12] : memref<4x32x16xf32, #tpu.memory_space<vmem>>, vector<1x32x16xf32>
    %40 = vector.shape_cast %39 : vector<1x32x16xf32> to vector<32x16xf32>
    %c0_13 = arith.constant 0 : index
    %c0_14 = arith.constant 0 : index
    %c0_15 = arith.constant 0 : index
    %41 = vector.load %arg4[%c0_13, %c0_14, %c0_15] : memref<2x32x32xf32, #tpu.memory_space<vmem>>, vector<1x32x32xf32>
    %42 = vector.shape_cast %41 : vector<1x32x32xf32> to vector<32x32xf32>
    %cst_16 = arith.constant dense<0.000000e+00> : vector<16x16xf32>
    %43 = tpu.matmul %36, %38, %cst_16 {dimension_numbers = #tpu.dot_dimension_numbers<[1], [0], [0], [1], [0, 0, 1, 1], [], []>} : vector<16x32xf32>, vector<32x16xf32>, vector<16x16xf32> -> vector<16x16xf32>
    %cst_17 = arith.constant dense<0.000000e+00> : vector<16x16xf32>
    %44 = tpu.matmul %36, %40, %cst_17 {dimension_numbers = #tpu.dot_dimension_numbers<[1], [0], [0], [1], [0, 0, 1, 1], [], []>} : vector<16x32xf32>, vector<32x16xf32>, vector<16x16xf32> -> vector<16x16xf32>
    %cst_18 = arith.constant dense<0.000000e+00> : vector<16x32xf32>
    %45 = tpu.matmul %36, %42, %cst_18 {dimension_numbers = #tpu.dot_dimension_numbers<[1], [0], [0], [1], [0, 0, 1, 1], [], []>} : vector<16x32xf32>, vector<32x32xf32>, vector<16x32xf32> -> vector<16x32xf32>
    %46 = vector.shape_cast %43 : vector<16x16xf32> to vector<2x8x16xf32>
    %47 = vector.shape_cast %44 : vector<16x16xf32> to vector<2x8x16xf32>
    %48 = vector.shape_cast %45 : vector<16x32xf32> to vector<2x8x32xf32>
    "tpu.trace_start"() <{level = 10 : i32, message = "bnd,bmd->bnm"}> : () -> ()
    %cst_19 = arith.constant dense<0.000000e+00> : vector<2x8x8xf32>
    %49 = tpu.matmul %46, %47, %cst_19 {dimension_numbers = #tpu.dot_dimension_numbers<[2], [2], [1], [1], [0, 0, 0, 1, 1, 1], [0], [0]>} : vector<2x8x16xf32>, vector<2x8x16xf32>, vector<2x8x8xf32> -> vector<2x8x8xf32>
    "tpu.trace_stop"() : () -> ()
    %cst_20 = arith.constant dense<0xFF800000> : vector<2x8xf32>
    %50 = vector.multi_reduction <maximumf>, %49, %cst_20 [2] : vector<2x8x8xf32> to vector<2x8xf32>
    %51 = vector.shape_cast %50 : vector<2x8xf32> to vector<2x8x1xf32>
    %52 = vector.broadcast %51 : vector<2x8x1xf32> to vector<2x8x8xf32>
    %53 = arith.subf %49, %52 : vector<2x8x8xf32>
    %54 = math.exp %53 : vector<2x8x8xf32>
    %cst_21 = arith.constant dense<0.000000e+00> : vector<2x8xf32>
    %55 = vector.multi_reduction <add>, %54, %cst_21 [2] : vector<2x8x8xf32> to vector<2x8xf32>
    %56 = vector.shape_cast %55 : vector<2x8xf32> to vector<2x8x1xf32>
    %57 = tpu.reciprocal %56 {approx = true} : vector<2x8x1xf32> -> vector<2x8x1xf32>
    %58 = vector.broadcast %57 : vector<2x8x1xf32> to vector<2x8x8xf32>
    %59 = arith.mulf %54, %58 : vector<2x8x8xf32>
    "tpu.trace_start"() <{level = 10 : i32, message = "bnm,bmd->bnd"}> : () -> ()
    %cst_22 = arith.constant dense<0.000000e+00> : vector<2x8x32xf32>
    %60 = tpu.matmul %59, %48, %cst_22 {dimension_numbers = #tpu.dot_dimension_numbers<[2], [1], [1], [2], [0, 0, 0, 1, 1, 2], [0], [0]>} : vector<2x8x8xf32>, vector<2x8x32xf32>, vector<2x8x32xf32> -> vector<2x8x32xf32>
    "tpu.trace_stop"() : () -> ()
    %61 = vector.shape_cast %60 : vector<2x8x32xf32> to vector<16x32xf32>
    %62 = arith.addf %1, %61 : vector<16x32xf32>
    %c1 = arith.constant 1 : index
    %c0_23 = arith.constant 0 : index
    %c0_24 = arith.constant 0 : index
    %63 = vector.load %arg3[%c1, %c0_23, %c0_24] : memref<4x32x16xf32, #tpu.memory_space<vmem>>, vector<1x32x16xf32>
    %64 = vector.shape_cast %63 : vector<1x32x16xf32> to vector<32x16xf32>
    %c3 = arith.constant 3 : index
    %c0_25 = arith.constant 0 : index
    %c0_26 = arith.constant 0 : index
    %65 = vector.load %arg3[%c3, %c0_25, %c0_26] : memref<4x32x16xf32, #tpu.memory_space<vmem>>, vector<1x32x16xf32>
    %66 = vector.shape_cast %65 : vector<1x32x16xf32> to vector<32x16xf32>
    %c1_27 = arith.constant 1 : index
    %c0_28 = arith.constant 0 : index
    %c0_29 = arith.constant 0 : index
    %67 = vector.load %arg4[%c1_27, %c0_28, %c0_29] : memref<2x32x32xf32, #tpu.memory_space<vmem>>, vector<1x32x32xf32>
    %68 = vector.shape_cast %67 : vector<1x32x32xf32> to vector<32x32xf32>
    %cst_30 = arith.constant dense<0.000000e+00> : vector<16x16xf32>
    %69 = tpu.matmul %36, %64, %cst_30 {dimension_numbers = #tpu.dot_dimension_numbers<[1], [0], [0], [1], [0, 0, 1, 1], [], []>} : vector<16x32xf32>, vector<32x16xf32>, vector<16x16xf32> -> vector<16x16xf32>
    %cst_31 = arith.constant dense<0.000000e+00> : vector<16x16xf32>
    %70 = tpu.matmul %36, %66, %cst_31 {dimension_numbers = #tpu.dot_dimension_numbers<[1], [0], [0], [1], [0, 0, 1, 1], [], []>} : vector<16x32xf32>, vector<32x16xf32>, vector<16x16xf32> -> vector<16x16xf32>
    %cst_32 = arith.constant dense<0.000000e+00> : vector<16x32xf32>
    %71 = tpu.matmul %36, %68, %cst_32 {dimension_numbers = #tpu.dot_dimension_numbers<[1], [0], [0], [1], [0, 0, 1, 1], [], []>} : vector<16x32xf32>, vector<32x32xf32>, vector<16x32xf32> -> vector<16x32xf32>
    %72 = vector.shape_cast %69 : vector<16x16xf32> to vector<2x8x16xf32>
    %73 = vector.shape_cast %70 : vector<16x16xf32> to vector<2x8x16xf32>
    %74 = vector.shape_cast %71 : vector<16x32xf32> to vector<2x8x32xf32>
    "tpu.trace_start"() <{level = 10 : i32, message = "bnd,bmd->bnm"}> : () -> ()
    %cst_33 = arith.constant dense<0.000000e+00> : vector<2x8x8xf32>
    %75 = tpu.matmul %72, %73, %cst_33 {dimension_numbers = #tpu.dot_dimension_numbers<[2], [2], [1], [1], [0, 0, 0, 1, 1, 1], [0], [0]>} : vector<2x8x16xf32>, vector<2x8x16xf32>, vector<2x8x8xf32> -> vector<2x8x8xf32>
    "tpu.trace_stop"() : () -> ()
    %cst_34 = arith.constant dense<0xFF800000> : vector<2x8xf32>
    %76 = vector.multi_reduction <maximumf>, %75, %cst_34 [2] : vector<2x8x8xf32> to vector<2x8xf32>
    %77 = vector.shape_cast %76 : vector<2x8xf32> to vector<2x8x1xf32>
    %78 = vector.broadcast %77 : vector<2x8x1xf32> to vector<2x8x8xf32>
    %79 = arith.subf %75, %78 : vector<2x8x8xf32>
    %80 = math.exp %79 : vector<2x8x8xf32>
    %cst_35 = arith.constant dense<0.000000e+00> : vector<2x8xf32>
    %81 = vector.multi_reduction <add>, %80, %cst_35 [2] : vector<2x8x8xf32> to vector<2x8xf32>
    %82 = vector.shape_cast %81 : vector<2x8xf32> to vector<2x8x1xf32>
    %83 = tpu.reciprocal %82 {approx = true} : vector<2x8x1xf32> -> vector<2x8x1xf32>
    %84 = vector.broadcast %83 : vector<2x8x1xf32> to vector<2x8x8xf32>
    %85 = arith.mulf %80, %84 : vector<2x8x8xf32>
    "tpu.trace_start"() <{level = 10 : i32, message = "bnm,bmd->bnd"}> : () -> ()
    %cst_36 = arith.constant dense<0.000000e+00> : vector<2x8x32xf32>
    %86 = tpu.matmul %85, %74, %cst_36 {dimension_numbers = #tpu.dot_dimension_numbers<[2], [1], [1], [2], [0, 0, 0, 1, 1, 2], [0], [0]>} : vector<2x8x8xf32>, vector<2x8x32xf32>, vector<2x8x32xf32> -> vector<2x8x32xf32>
    "tpu.trace_stop"() : () -> ()
    %87 = vector.shape_cast %86 : vector<2x8x32xf32> to vector<16x32xf32>
    %88 = arith.addf %62, %87 : vector<16x32xf32>
    %cst_37 = arith.constant 0.000000e+00 : f32
    %89 = vector.broadcast %cst_37 : f32 to vector<16x32xf32>
    %90 = arith.maximumf %88, %89 : vector<16x32xf32>
    %cst_38 = arith.constant dense<0.000000e+00> : vector<16xf32>
    %91 = vector.multi_reduction <add>, %90, %cst_38 [1] : vector<16x32xf32> to vector<16xf32>
    %92 = vector.shape_cast %91 : vector<16xf32> to vector<16x1xf32>
    %cst_39 = arith.constant 3.200000e+01 : f32
    %93 = vector.broadcast %cst_39 : f32 to vector<16x1xf32>
    %94 = arith.divf %92, %93 : vector<16x1xf32>
    %95 = vector.broadcast %94 : vector<16x1xf32> to vector<16x32xf32>
    %96 = arith.subf %90, %95 : vector<16x32xf32>
    %97 = arith.mulf %96, %96 : vector<16x32xf32>
    %cst_40 = arith.constant dense<0.000000e+00> : vector<16xf32>
    %98 = vector.multi_reduction <add>, %97, %cst_40 [1] : vector<16x32xf32> to vector<16xf32>
    %99 = vector.shape_cast %98 : vector<16xf32> to vector<16x1xf32>
    %cst_41 = arith.constant 3.200000e+01 : f32
    %100 = vector.broadcast %cst_41 : f32 to vector<16x1xf32>
    %101 = arith.divf %99, %100 : vector<16x1xf32>
    %102 = vector.broadcast %94 : vector<16x1xf32> to vector<16x32xf32>
    %103 = arith.subf %90, %102 : vector<16x32xf32>
    %cst_42 = arith.constant 9.99999974E-6 : f32
    %104 = vector.broadcast %cst_42 : f32 to vector<16x1xf32>
    %105 = arith.addf %101, %104 : vector<16x1xf32>
    %106 = math.rsqrt %105 : vector<16x1xf32>
    %107 = vector.broadcast %106 : vector<16x1xf32> to vector<16x32xf32>
    %108 = arith.mulf %103, %107 : vector<16x32xf32>
    %109 = vector.shape_cast %8 : vector<32xf32> to vector<1x32xf32>
    %110 = vector.broadcast %109 : vector<1x32xf32> to vector<16x32xf32>
    %111 = arith.mulf %108, %110 : vector<16x32xf32>
    %112 = vector.shape_cast %10 : vector<32xf32> to vector<1x32xf32>
    %113 = vector.broadcast %112 : vector<1x32xf32> to vector<16x32xf32>
    %114 = arith.addf %111, %113 : vector<16x32xf32>
    %c0_43 = arith.constant 0 : index
    %c0_44 = arith.constant 0 : index
    %115 = vector.load %arg5[%c0_43, %c0_44] : memref<32x32xf32, #tpu.memory_space<vmem>>, vector<32x32xf32>
    %cst_45 = arith.constant dense<0.000000e+00> : vector<16x32xf32>
    %116 = tpu.matmul %114, %115, %cst_45 {dimension_numbers = #tpu.dot_dimension_numbers<[1], [0], [0], [1], [0, 0, 1, 1], [], []>} : vector<16x32xf32>, vector<32x32xf32>, vector<16x32xf32> -> vector<16x32xf32>
    %117 = vector.shape_cast %12 : vector<32xf32> to vector<1x32xf32>
    %118 = vector.broadcast %117 : vector<1x32xf32> to vector<16x32xf32>
    %119 = arith.addf %116, %118 : vector<16x32xf32>
    %120 = arith.addf %119, %90 : vector<16x32xf32>
    %cst_46 = arith.constant 0.000000e+00 : f32
    %121 = vector.broadcast %cst_46 : f32 to vector<16x32xf32>
    %122 = arith.maximumf %120, %121 : vector<16x32xf32>
    %123 = vector.shape_cast %122 : vector<16x32xf32> to vector<2x8x32xf32>
    %c0_47 = arith.constant 0 : index
    %c0_48 = arith.constant 0 : index
    %c0_49 = arith.constant 0 : index
    %124 = vector.load %arg6[%c0_47, %c0_48, %c0_49] : memref<2x8x32xf32, #tpu.memory_space<vmem>>, vector<2x8x32xf32>
    tpu.vector_store %arg6[%c0_47, %c0_48, %c0_49], %123 {strides = array<i32>} : memref<2x8x32xf32, #tpu.memory_space<vmem>>, vector<2x8x32xf32>,
    return
  }
  func.func @transform_0(%arg0: i32) -> (i32, i32, i32) {
    %c0_i32 = arith.constant 0 : i32
    %c0_i32_0 = arith.constant 0 : i32
    %c0_i32_1 = arith.constant 0 : i32
    return %arg0, %c0_i32, %c0_i32_0 : i32, i32, i32
  }
  func.func @transform_1(%arg0: i32) -> (i32, i32) {
    %c0_i32 = arith.constant 0 : i32
    %c0_i32_0 = arith.constant 0 : i32
    %c0_i32_1 = arith.constant 0 : i32
    return %c0_i32, %c0_i32_0 : i32, i32
  }
  func.func @transform_2(%arg0: i32) -> (i32, i32, i32) {
    %c0_i32 = arith.constant 0 : i32
    %c0_i32_0 = arith.constant 0 : i32
    %c0_i32_1 = arith.constant 0 : i32
    %c0_i32_2 = arith.constant 0 : i32
    return %c0_i32, %c0_i32_0, %c0_i32_1 : i32, i32, i32
  }
  func.func @transform_3(%arg0: i32) -> (i32, i32, i32) {
    %c0_i32 = arith.constant 0 : i32
    %c0_i32_0 = arith.constant 0 : i32
    %c0_i32_1 = arith.constant 0 : i32
    %c0_i32_2 = arith.constant 0 : i32
    return %c0_i32, %c0_i32_0, %c0_i32_1 : i32, i32, i32
  }
  func.func @transform_4(%arg0: i32) -> (i32, i32) {
    %c0_i32 = arith.constant 0 : i32
    %c0_i32_0 = arith.constant 0 : i32
    %c0_i32_1 = arith.constant 0 : i32
    return %c0_i32, %c0_i32_0 : i32, i32
  }
  func.func @transform_5(%arg0: i32) -> (i32, i32, i32) {
    %c0_i32 = arith.constant 0 : i32
    %c0_i32_0 = arith.constant 0 : i32
    %c0_i32_1 = arith.constant 0 : i32
    return %arg0, %c0_i32, %c0_i32_0 : i32, i32, i32
  }
}

</mosaic_0001>

<bundles_post_ra>
// kernel: transformer_forward.1
= control target key start
LH: loop header
LB: loop body
LE: loop exit
PB: predicated region body
PF: predicated region fallthrough
CT: control target
= control target key end

     0   :  { %vm24_vm0 = vcmask 261120   ;;  %s1866_s0 = inlined_call_operand.vmem [shape: f32[2,8,32], index: 0, kind: input, shape index: {}]   ;;  %s1867_s1 = inlined_call_operand.vmem [shape: f32[8,32], index: 1, kind: input, shape index: {}]   ;;  %s1868_s2 = inlined_call_operand.vmem [shape: f32[4,32,16], index: 2, kind: input, shape index: {}]   ;;  %s1869_s3 = inlined_call_operand.vmem [shape: f32[2,32,32], index: 3, kind: input, shape index: {}]   ;;  %s1870_s4 = inlined_call_operand.vmem [shape: f32[32,32], index: 4, kind: input, shape index: {}]   ;;  %s1871_s5 = inlined_call_operand.hbm [shape: f32[2,8,32], index: 5, kind: output, shape index: {}]  }
   0x1   :  { %v1651_v0 = vld [vmem:[%s1866_s0] sm:$0xff]  ;;  %v1656_v1 = vld [vmem:[%s1866_s0 + $0x8] sm:$0xff] }
   0x2   :  { %10 = vsyncpa [#allocation3], 0  ;;  %v25_v2 = vsel %vm24_vm0, %v1651_v0, 0.0  ;;  %v28_v3 = vsel %vm24_vm0, %v1656_v1, 0.0  ;;  %v67_v14 = vld [vmem:[%s1868_s2 + $0x18] sm:$0xff]  ;;  %v66_v16 = vld [vmem:[%s1868_s2 + $0x10] sm:$0xff]  ;;  %v52_v27 = vlaneseq }
   0x3   :  { %26 = vadd.xlane.f32.xlu0 %v25_v2  ;;  %1445 = vmatprep.subr.mxu0 %v67_v14  ;;  %v1348_v15 = vld [vmem:[%s1868_s2 + $0x58] sm:$0xff]  ;;  %v1347_v17 = vld [vmem:[%s1868_s2 + $0x50] sm:$0xff]  ;;  %v65_v18 = vld [vmem:[%s1868_s2 + $0x8] sm:$0xff]  ;;  %v1613_v55 = vmov 0.0   ;;  %vm1614_vm1 = vmmov 0   ;;  %vm308_vm2 = vcmask 130048  }
   0x4   :  { %1446 = vmatpush3.msra.mxu0 %v67_v14  ;;  %1456 = vmatprep.subr.mxu1 %v1348_v15  ;;  %v1346_v19 = vld [vmem:[%s1868_s2 + $0x48] sm:$0xff]  ;;  %v64_v20 = vld [vmem:[%s1868_s2] sm:$0xff]  ;;  %v76_v22 = vld [vmem:[%s1869_s3 + $0x18] sm:$0xff]  ;;  %v1693_v30 = vshrl.u32 %v52_v27, 7  ;;  %vm461_vm3 = vcmask 64512  }
   0x5   :  { %1447 = vmatprep.subr.mxu0 %v66_v16  ;;  %1457 = vmatpush3.msra.mxu1 %v1348_v15  ;;  %v1345_v21 = vld [vmem:[%s1868_s2 + $0x40] sm:$0xff]  ;;  %v75_v44 = vld [vmem:[%s1869_s3 + $0x10] sm:$0xff]  ;;  %v74_v45 = vld [vmem:[%s1869_s3 + $0x8] sm:$0xff] }
   0x6   :  { %1448 = vmatpush3.msra.mxu0 %v66_v16  ;;  %1458 = vmatprep.subr.mxu1 %v1347_v17  ;;  %v54_v31 = vsub.s32 0, %v1693_v30  ;;  %v1699_v32 = vld [vmem:[%s1867_s1] sm:$0xff]  ;;  %v60_v33 = vsub.s32 1, %v1693_v30  ;;  %v1364_v47 = vld [vmem:[%s1868_s2 + $0x38] sm:$0xff]  ;;  %v1363_v48 = vld [vmem:[%s1868_s2 + $0x30] sm:$0xff] }
   0x7   :  { %29 = vadd.xlane.f32.xlu0 %v28_v3  ;;  %1449 = vmatprep.subr.mxu0 %v65_v18  ;;  %v73_v46 = vld [vmem:[%s1869_s3] sm:$0xff]  ;;  %v1362_v49 = vld [vmem:[%s1868_s2 + $0x28] sm:$0xff]  ;;  %v1372_v51 = vld [vmem:[%s1869_s3 + $0x38] sm:$0xff] }
   0x8   :  { %1459 = vmatpush3.msra.mxu1 %v1347_v17  ;;  %1450 = vmatpush3.msra.mxu0 %v65_v18  ;;  %v55_v34 = vrot.slane %v1699_v32, %v54_v31  ;;  %v61_v37 = vrot.slane %v1699_v32, %v60_v33  ;;  %v1361_v50 = vld [vmem:[%s1868_s2 + $0x20] sm:$0xff]  ;;  %v1371_v52 = vld [vmem:[%s1869_s3 + $0x30] sm:$0xff]  ;;  %v1370_v53 = vld [vmem:[%s1869_s3 + $0x28] sm:$0xff] }
   0x9   :  { %1460 = vmatprep.subr.mxu1 %v1346_v19  ;;  %1451 = vmatprep.subr.mxu0 %v64_v20  ;;  %v1369_v54 = vld [vmem:[%s1869_s3 + $0x20] sm:$0xff]  ;;  %v1367_v27 = vld [vmem:[%s1868_s2 + $0x70] sm:$0xff] }
   0xa   :  { %1461 = vmatpush3.msra.mxu1 %v1346_v19  ;;  %1452 = vmatpush3.msra.mxu0 %v64_v20 }
   0xb   :  { %1462 = vmatprep.subr.mxu1 %v1345_v21  ;;  %1467 = vmatprep.subr.mxu0 %v76_v22 }
   0xc   :  { %1463 = vmatpush3.msra.mxu1 %v1345_v21 }
   0xd   :  { %1478 = vmatprep.subr.mxu1 %v1613_v55 }
  0x8c   :  { %v27_v4 = vpop.xlane.xlu0 %26 }
  0x8d   :  { %v32_v5 = vmul.f32 0.03125, %v27_v4 }
  0x8f   :  { %v34_v6 = vsub.f32 %v1651_v0, %v32_v5 }
  0x90   :  { %v30_v7 = vpop.xlane.xlu0 %29 }
  0x91   :  { %v33_v8 = vmul.f32 0.03125, %v30_v7  ;;  %v36_v9 = vmul.f32 %v34_v6, %v34_v6 }
  0x93   :  { %v35_v10 = vsub.f32 %v1656_v1, %v33_v8  ;;  %v38_v11 = vsel %vm24_vm0, %v36_v9, 0.0 }
  0x94   :  { %39 = vadd.xlane.f32.xlu1 %v38_v11 }
  0x95   :  { %v37_v12 = vmul.f32 %v35_v10, %v35_v10 }
  0x97   :  { %v41_v13 = vsel %vm24_vm0, %v37_v12, 0.0 }
  0x98   :  { %42 = vadd.xlane.f32.xlu1 %v41_v13 }
 0x11d   :  { %v40_v23 = vpop.xlane.xlu1 %39 }
 0x11e   :  { %v44_v24 = vmul.f32 0.03125, %v40_v23 }
 0x120   :  { %v46_v25 = vadd.f32 1e-05, %v44_v24  ;;  %v1368_v24 = vld [vmem:[%s1868_s2 + $0x78] sm:$0xff] }
 0x121   :  { %v43_v26 = vpop.xlane.xlu1 %42 }
 0x122   :  { %1567 = vrsqrt.f32 %v46_v25  ;;  %v45_v28 = vmul.f32 0.03125, %v43_v26 }
 0x124   :  { %v47_v29 = vadd.f32 1e-05, %v45_v28  ;;  %v1366_v28 = vld [vmem:[%s1868_s2 + $0x68] sm:$0xff] }
 0x126   :  { %1569 = vrsqrt.f32 %v47_v29  ;;  %v1365_v29 = vld [vmem:[%s1868_s2 + $0x60] sm:$0xff] }
 0x12f   :  { %v1568_v35 = vpop.eup %1567 }
 0x130   :  { %v50_v36 = vmul.f32 %v1568_v35, %v34_v6 }
 0x132   :  { %v56_v38 = vmul.f32 %v55_v34, %v50_v36 }
 0x133   :  { %v1570_v39 = vpop.eup %1569 }
 0x134   :  { %v51_v40 = vmul.f32 %v1570_v39, %v35_v10  ;;  %v1704_v41 = vadd.f32 %v61_v37, %v56_v38 }
 0x136   :  { %v57_v42 = vmul.f32 %v55_v34, %v51_v40  ;;  %1453 = vmatprep.mubr.msk.f32.mxu0 %vm24_vm0, %v1704_v41  ;;  %1464 = vmatprep.mubr.msk.f32.mxu1 %vm24_vm0, %v1704_v41 }
 0x138   :  { %v1710_v43 = vadd.f32 %v61_v37, %v57_v42 }
 0x13a   :  { %1454 = vmatmul.mubr.msk.f32.vlgmr.msra.gmra.mxu0 %vm24_vm0, %v1710_v43  ;;  %1465 = vmatmul.mubr.msk.f32.vlgmr.msra.gmra.mxu1 %vm24_vm0, %v1710_v43 }
 0x13b   :  { %1468 = vmatpush3.msra.mxu0 %v76_v22  ;;  %1475 = vmatprep.mubr.msk.f32.mxu0 %vm24_vm0, %v1704_v41 }
 0x13c   :  { %1469 = vmatprep.subr.mxu0 %v75_v44  ;;  %1480 = vmatprep.mubr.msk.f32.mxu1 %vm1614_vm1, %v1613_v55 }
 0x13d   :  { %1470 = vmatpush3.msra.mxu0 %v75_v44 }
 0x13e   :  { %1471 = vmatprep.subr.mxu0 %v74_v45 }
 0x13f   :  { %1472 = vmatpush3.msra.mxu0 %v74_v45 }
 0x140   :  { %1473 = vmatprep.subr.mxu0 %v73_v46 }
 0x141   :  { %1474 = vmatpush3.msra.mxu0 %v73_v46 }
 0x142   :  { %1476 = vmatmul.mubr.msk.f32.vlgmr.msra.gmra.mxu0 %vm24_vm0, %v1710_v43  ;;  %1498 = vmatprep.subr.mxu0 %v1364_v47 }
 0x143   :  { %1499 = vmatpush3.msra.mxu0 %v1364_v47  ;;  %1506 = vmatprep.mubr.msk.f32.mxu0 %vm24_vm0, %v1704_v41 }
 0x144   :  { %1500 = vmatprep.subr.mxu0 %v1363_v48 }
 0x145   :  { %1501 = vmatpush3.msra.mxu0 %v1363_v48 }
 0x146   :  { %1502 = vmatprep.subr.mxu0 %v1362_v49 }
 0x147   :  { %1503 = vmatpush3.msra.mxu0 %v1362_v49 }
 0x148   :  { %1504 = vmatprep.subr.mxu0 %v1361_v50 }
 0x149   :  { %1505 = vmatpush3.msra.mxu0 %v1361_v50 }
 0x14a   :  { %1507 = vmatmul.mubr.msk.f32.vlgmr.msra.gmra.mxu0 %vm24_vm0, %v1710_v43  ;;  %1520 = vmatprep.subr.mxu0 %v1372_v51 }
 0x14b   :  { %1521 = vmatpush3.msra.mxu0 %v1372_v51  ;;  %1528 = vmatprep.mubr.msk.f32.mxu0 %vm24_vm0, %v1704_v41 }
 0x14c   :  { %1522 = vmatprep.subr.mxu0 %v1371_v52 }
 0x14d   :  { %1523 = vmatpush3.msra.mxu0 %v1371_v52 }
 0x14e   :  { %1524 = vmatprep.subr.mxu0 %v1370_v53 }
 0x14f   :  { %1525 = vmatpush3.msra.mxu0 %v1370_v53 }
 0x150   :  { %1526 = vmatprep.subr.mxu0 %v1369_v54 }
 0x151   :  { %1527 = vmatpush3.msra.mxu0 %v1369_v54 }
 0x152   :  { %1529 = vmatmul.mubr.msk.f32.vlgmr.msra.gmra.mxu0 %vm24_vm0, %v1710_v43  ;;  %1541 = vmatprep.subr.mxu0 %v1613_v55 }
 0x153   :  { %1543 = vmatprep.mubr.msk.f32.mxu0 %vm1614_vm1, %v1613_v55 }
 0x1fa   :  { %v1466_v56 = vpop.f32.mrf.mxu1  ;;  %v1455_v57 = vpop.f32.mrf.mxu0 }
 0x1fc   :  { %v224_v58 = vpop.f32.mrf.mxu1  ;;  %v149_v59 = vpop.f32.mrf.mxu0 }
 0x1fd   :  { %1479 = vmatpush3.xpose.msk.msra.mxu1 %vm308_vm2, %v224_v58 }
 0x1fe   :  { %1483 = vmatprep.subr.mxu1 %v1613_v55 }
 0x200   :  { %1481 = vmatmul.mubr.msk.f32.vlgmr.msra.gmra.mxu1 %vm308_vm2, %v149_v59 }
 0x201   :  { %1484 = vmatpush3.xpose.msk.msra.mxu1 %vm308_vm2, %v1466_v56  ;;  %1485 = vmatprep.mubr.msk.f32.mxu1 %vm1614_vm1, %v1613_v55 }
 0x202   :  { %v1477_v60 = vpop.f32.mrf.mxu0  ;;  %1488 = vmatprep.subr.mxu1 %v1613_v55 }
 0x204   :  { %v299_v61 = vpop.f32.mrf.mxu0  ;;  %1486 = vmatmul.mubr.msk.f32.vlgmr.msra.gmra.mxu1 %vm308_vm2, %v1455_v57 }
 0x205   :  { %1489 = vmatpush3.msra.mxu1 %v299_v61  ;;  %1490 = vmatprep.mubr.msk.f32.mxu1 %vm1614_vm1, %v1613_v55 }
 0x206   :  { %1493 = vmatprep.subr.mxu1 %v1613_v55 }
 0x20a   :  { %v1778_v62 = vpop.f32.mrf.mxu0 }
 0x20c   :  { %v1780_v63 = vpop.f32.mrf.mxu0 }
 0x212   :  { %v1782_v2 = vpop.f32.mrf.mxu0 }
 0x214   :  { %v863_v3 = vpop.f32.mrf.mxu0 }
 0x215   :  { %1542 = vmatpush3.msra.mxu0 %v863_v3 }
 0x2c0   :  { %v381_v4 = vpop.f32.mrf.mxu1 }
 0x2c1   :  { %v462_v5 = vsel %vm461_vm3, %v381_v4, -inf }
 0x2c2   :  { %463 = vmax.xlane.f32.xlu0 %v462_v5  ;;  %v1482_v6 = vpop.f32.mrf.mxu1 }
 0x2c4   :  { %v457_v7 = vpop.f32.mrf.mxu1 }
 0x2c5   :  { %v465_v8 = vsel %vm461_vm3, %v457_v7, -inf }
 0x2c6   :  { %466 = vmax.xlane.f32.xlu1 %v465_v8  ;;  %v1487_v9 = vpop.f32.mrf.mxu1 }
 0x34b   :  { %v464_v10 = vpop.xlane.xlu0 %463 }
 0x34c   :  { %v468_v11 = vsub.f32 %v381_v4, %v464_v10 }
 0x34e   :  { %v470_v12 = vmul.f32 1.442695, %v468_v11 }
 0x34f   :  { %v467_v13 = vpop.xlane.xlu1 %466 }
 0x350   :  { %1571 = vpow2.f32 %v470_v12  ;;  %v469_v14 = vsub.f32 %v457_v7, %v467_v13 }
 0x352   :  { %v472_v15 = vmul.f32 1.442695, %v469_v14 }
 0x354   :  { %1573 = vpow2.f32 %v472_v15 }
 0x35d   :  { %v1572_v16 = vpop.eup %1571 }
 0x35e   :  { %v474_v17 = vsel %vm461_vm3, %v1572_v16, 0.0 }
 0x35f   :  { %475 = vadd.xlane.f32.xlu0 %v474_v17 }
 0x361   :  { %v1574_v18 = vpop.eup %1573 }
 0x362   :  { %v477_v19 = vsel %vm461_vm3, %v1574_v18, 0.0 }
 0x363   :  { %478 = vadd.xlane.f32.xlu1 %v477_v19  ;;  %v1236_v19 = vld [vmem:[%s1870_s4 + $0x10] sm:$0xff] }
 0x3e8   :  { %v476_v20 = vpop.xlane.xlu0 %475 }
 0x3e9   :  { %1575 = vrcp.f32 %v476_v20  ;;  %v1235_v20 = vld [vmem:[%s1870_s4 + $0x8] sm:$0xff] }
 0x3ec   :  { %v479_v21 = vpop.xlane.xlu1 %478 }
 0x3ed   :  { %1577 = vrcp.f32 %v479_v21  ;;  %v1234_v21 = vld [vmem:[%s1870_s4] sm:$0xff] }
 0x3f6   :  { %v1576_v22 = vpop.eup %1575 }
 0x3f7   :  { %v482_v23 = vmul.f32 %v1576_v22, %v1572_v16 }
 0x3f9   :  { %1491 = vmatmul.mubr.msk.f32.vlgmr.msra.gmra.mxu1 %vm461_vm3, %v482_v23 }
 0x3fa   :  { %v1578_v25 = vpop.eup %1577  ;;  %1494 = vmatpush3.msra.mxu1 %v1477_v60  ;;  %1495 = vmatprep.mubr.msk.f32.mxu1 %vm1614_vm1, %v1613_v55 }
 0x3fb   :  { %1509 = vmatprep.subr.mxu1 %v1368_v24  ;;  %v483_v26 = vmul.f32 %v1578_v25, %v1574_v18  ;;  %v1237_v18 = vld [vmem:[%s1870_s4 + $0x18] sm:$0xff]  ;;  %s1615_s4 = smov [#allocation2]  }
 0x3fc   :  { %1551 = vmatprep.subr.mxu0 %v1237_v18  ;;  %s1334_s23 = sshll.u32 %s1615_s4, 4  ;;  %s1335_s23 = int_to_ptr.vmem [resolvable:$true] %s1334_s23 }
 0x3fd   :  { %1496 = vmatmul.mubr.msk.f32.vlgmr.msra.gmra.mxu1 %vm461_vm3, %v483_v26  ;;  %s1591_s24 = scalar_lea.vmem %s1335_s23, 256  ;;  %p1596_p1 = scmp.lt.s32.totalorder %s1335_s23, %s1335_s23 }
 0x3fe   :  { %1510 = vmatpush3.msra.mxu1 %v1368_v24  ;;  %1517 = vmatprep.mubr.msk.f32.mxu1 %vm24_vm0, %v1704_v41  ;;  %p1592_p0 = scmp.ne.s32.totalorder %s1335_s23, %s1591_s24  ;;  %p1597_p2 = scmp.lt.s32.totalorder %s1591_s24, %s1591_s24 }
 0x3ff   :  { %1511 = vmatprep.subr.mxu1 %v1367_v27 }
 0x400   :  { %1512 = vmatpush3.msra.mxu1 %v1367_v27  ;;  %p1598_p3 = por %p1597_p2, %p1596_p1 }
 0x401   :  { %1513 = vmatprep.subr.mxu1 %v1366_v28 }
 0x402   :  { %1514 = vmatpush3.msra.mxu1 %v1366_v28  ;;  %v1224_v28 = vsub.s32 2, %v1693_v30  ;;  %p1599_p4 = pnand %p1598_p3, %p1592_p0 }
 0x403   :  { %1515 = vmatprep.subr.mxu1 %v1365_v29 }
 0x404   :  { %1516 = vmatpush3.msra.mxu1 %v1365_v29  ;;  %v1230_v29 = vsub.s32 3, %v1693_v30 }
 0x405   :  { %1518 = vmatmul.mubr.msk.f32.vlgmr.msra.gmra.mxu1 %vm24_vm0, %v1710_v43  ;;  %1531 = vmatprep.subr.mxu1 %v1613_v55 }
 0x406   :  { %1533 = vmatprep.mubr.msk.f32.mxu1 %vm1614_vm1, %v1613_v55 }
 0x4b9   :  { %v553_v31 = vpop.f32.mrf.mxu1 }
 0x4ba   :  { %v630_v60 = vadd.f32 %v553_v31, %v1651_v0  ;;  %v1225_v31 = vrot.slane %v1699_v32, %v1224_v28 }
 0x4bb   :  { %v1492_v33 = vpop.f32.mrf.mxu1 }
 0x4bd   :  { %v626_v34 = vpop.f32.mrf.mxu1 }
 0x4bf   :  { %v1497_v35 = vpop.f32.mrf.mxu1 }
 0x4c0   :  { %v1231_v35 = vrot.slane %v1699_v32, %v1230_v29 }
 0x4c5   :  { %v1519_v36 = vpop.f32.mrf.mxu1 }
 0x4c7   :  { %v788_v37 = vpop.f32.mrf.mxu1 }
 0x4c8   :  { %1532 = vmatpush3.xpose.msk.msra.mxu1 %vm308_vm2, %v788_v37 }
 0x4c9   :  { %1536 = vmatprep.subr.mxu1 %v1613_v55 }
 0x4cb   :  { %1534 = vmatmul.mubr.msk.f32.vlgmr.msra.gmra.mxu1 %vm308_vm2, %v1780_v63 }
 0x4cc   :  { %1537 = vmatpush3.xpose.msk.msra.mxu1 %vm308_vm2, %v1519_v36  ;;  %1538 = vmatprep.mubr.msk.f32.mxu1 %vm1614_vm1, %v1613_v55 }
 0x4cd   :  { %1546 = vmatprep.subr.mxu1 %v1613_v55 }
 0x4cf   :  { %1539 = vmatmul.mubr.msk.f32.vlgmr.msra.gmra.mxu1 %vm308_vm2, %v1778_v62 }
 0x4d0   :  { %1547 = vmatpush3.msra.mxu1 %v1782_v2  ;;  %1548 = vmatprep.mubr.msk.f32.mxu1 %vm1614_vm1, %v1613_v55  ;;  %v631_v2 = vadd.f32 %v626_v34, %v1656_v1 }
 0x58b   :  { %v944_v38 = vpop.f32.mrf.mxu1 }
 0x58c   :  { %v1024_v39 = vsel %vm461_vm3, %v944_v38, -inf }
 0x58d   :  { %1025 = vmax.xlane.f32.xlu0 %v1024_v39  ;;  %v1535_v40 = vpop.f32.mrf.mxu1 }
 0x58f   :  { %v1020_v41 = vpop.f32.mrf.mxu1 }
 0x590   :  { %v1027_v42 = vsel %vm461_vm3, %v1020_v41, -inf }
 0x591   :  { %1028 = vmax.xlane.f32.xlu1 %v1027_v42  ;;  %v1540_v43 = vpop.f32.mrf.mxu1  ;;  %v1240_v42 = vsub.s32 4, %v1693_v30 }
 0x593   :  { %v1241_v43 = vrot.slane %v1699_v32, %v1240_v42 }
 0x616   :  { %v1026_v44 = vpop.xlane.xlu0 %1025 }
 0x617   :  { %v1030_v45 = vsub.f32 %v944_v38, %v1026_v44 }
 0x619   :  { %v1032_v46 = vmul.f32 1.442695, %v1030_v45 }
 0x61a   :  { %v1029_v47 = vpop.xlane.xlu1 %1028 }
 0x61b   :  { %1579 = vpow2.f32 %v1032_v46  ;;  %v1031_v48 = vsub.f32 %v1020_v41, %v1029_v47 }
 0x61d   :  { %v1034_v49 = vmul.f32 1.442695, %v1031_v48 }
 0x61f   :  { %1581 = vpow2.f32 %v1034_v49 }
 0x628   :  { %v1580_v50 = vpop.eup %1579 }
 0x629   :  { %v1036_v51 = vsel %vm461_vm3, %v1580_v50, 0.0 }
 0x62a   :  { %1037 = vadd.xlane.f32.xlu0 %v1036_v51 }
 0x62c   :  { %v1582_v52 = vpop.eup %1581 }
 0x62d   :  { %v1039_v53 = vsel %vm461_vm3, %v1582_v52, 0.0 }
 0x62e   :  { %1040 = vadd.xlane.f32.xlu1 %v1039_v53 }
 0x6b3   :  { %v1038_v54 = vpop.xlane.xlu0 %1037 }
 0x6b4   :  { %1583 = vrcp.f32 %v1038_v54 }
 0x6b7   :  { %v1041_v55 = vpop.xlane.xlu1 %1040 }
 0x6b8   :  { %1585 = vrcp.f32 %v1041_v55 }
 0x6c1   :  { %v1584_v56 = vpop.eup %1583 }
 0x6c2   :  { %v1044_v57 = vmul.f32 %v1584_v56, %v1580_v50 }
 0x6c4   :  { %1544 = vmatmul.mubr.msk.f32.vlgmr.msra.gmra.mxu0 %vm461_vm3, %v1044_v57 }
 0x6c5   :  { %v1586_v58 = vpop.eup %1585  ;;  %1552 = vmatpush3.msra.mxu0 %v1237_v18 }
 0x6c6   :  { %v1045_v59 = vmul.f32 %v1586_v58, %v1582_v52  ;;  %1553 = vmatprep.subr.mxu0 %v1236_v19 }
 0x6c7   :  { %1554 = vmatpush3.msra.mxu0 %v1236_v19 }
 0x6c8   :  { %1549 = vmatmul.mubr.msk.f32.vlgmr.msra.gmra.mxu1 %vm461_vm3, %v1045_v59  ;;  %1555 = vmatprep.subr.mxu0 %v1235_v20 }
 0x6c9   :  { %1556 = vmatpush3.msra.mxu0 %v1235_v20 }
 0x6ca   :  { %1557 = vmatprep.subr.mxu0 %v1234_v21 }
 0x6cb   :  { %1558 = vmatpush3.msra.mxu0 %v1234_v21 }
 0x784   :  { %v1115_v61 = vpop.f32.mrf.mxu0 }
 0x785   :  { %v1192_v62 = vadd.f32 %v1115_v61, %v630_v60 }
 0x786   :  { %v1545_v63 = vpop.f32.mrf.mxu0 }
 0x787   :  { %v1832_v3 = vmax.f32 %v1192_v62, 0.0 }
 0x788   :  { %v1188_v4 = vpop.f32.mrf.mxu1 }
 0x789   :  { %v1193_v5 = vadd.f32 %v1188_v4, %v631_v2  ;;  %v1196_v6 = vsel %vm24_vm0, %v1832_v3, 0.0 }
 0x78a   :  { %1197 = vadd.xlane.f32.xlu0 %v1196_v6  ;;  %v1550_v7 = vpop.f32.mrf.mxu1 }
 0x78b   :  { %v1195_v8 = vmax.f32 %v1193_v5, 0.0 }
 0x78d   :  { %v1199_v9 = vsel %vm24_vm0, %v1195_v8, 0.0 }
 0x78e   :  { %1200 = vadd.xlane.f32.xlu1 %v1199_v9 }
 0x813   :  { %v1198_v10 = vpop.xlane.xlu0 %1197 }
 0x814   :  { %v1202_v0 = vmul.f32 0.03125, %v1198_v10 }
 0x816   :  { %v1204_v11 = vsub.f32 %v1832_v3, %v1202_v0 }
 0x817   :  { %v1201_v12 = vpop.xlane.xlu1 %1200 }
 0x818   :  { %v1203_v13 = vmul.f32 0.03125, %v1201_v12  ;;  %v1206_v1 = vmul.f32 %v1204_v11, %v1204_v11 }
 0x81a   :  { %v1205_v14 = vsub.f32 %v1195_v8, %v1203_v13  ;;  %v1208_v15 = vsel %vm24_vm0, %v1206_v1, 0.0 }
 0x81b   :  { %1209 = vadd.xlane.f32.xlu0 %v1208_v15 }
 0x81c   :  { %v1207_v16 = vmul.f32 %v1205_v14, %v1205_v14 }
 0x81e   :  { %v1211_v17 = vsel %vm24_vm0, %v1207_v16, 0.0 }
 0x81f   :  { %1212 = vadd.xlane.f32.xlu1 %v1211_v17 }
 0x8a4   :  { %v1210_v22 = vpop.xlane.xlu0 %1209 }
 0x8a5   :  { %v1214_v23 = vmul.f32 0.03125, %v1210_v22 }
 0x8a7   :  { %v1216_v24 = vadd.f32 1e-05, %v1214_v23 }
 0x8a8   :  { %v1213_v25 = vpop.xlane.xlu1 %1212 }
 0x8a9   :  { %1587 = vrsqrt.f32 %v1216_v24  ;;  %v1215_v26 = vmul.f32 0.03125, %v1213_v25 }
 0x8ab   :  { %v1217_v27 = vadd.f32 1e-05, %v1215_v26 }
 0x8ad   :  { %1589 = vrsqrt.f32 %v1217_v27 }
 0x8b6   :  { %v1588_v33 = vpop.eup %1587 }
 0x8b7   :  { %v1220_v34 = vmul.f32 %v1588_v33, %v1204_v11 }
 0x8b9   :  { %v1226_v36 = vmul.f32 %v1225_v31, %v1220_v34 }
 0x8ba   :  { %v1590_v37 = vpop.eup %1589 }
 0x8bb   :  { %v1221_v38 = vmul.f32 %v1590_v37, %v1205_v14  ;;  %v1232_v39 = vadd.f32 %v1231_v35, %v1226_v36 }
 0x8bd   :  { %v1227_v40 = vmul.f32 %v1225_v31, %v1221_v38  ;;  %1559 = vmatprep.mubr.msk.f32.mxu0 %vm24_vm0, %v1232_v39 }
 0x8bf   :  { %v1233_v41 = vadd.f32 %v1231_v35, %v1227_v40 }
 0x8c1   :  { %1560 = vmatmul.mubr.msk.f32.vlgmr.msra.gmra.mxu0 %vm24_vm0, %v1233_v41 }
 0x981   :  { %v1561_v44 = vpop.f32.mrf.mxu0 }
 0x982   :  { %v1320_v45 = vadd.f32 %v1561_v44, %v1241_v43 }
 0x983   :  { %v1314_v46 = vpop.f32.mrf.mxu0 }
 0x984   :  { %v1324_v47 = vadd.f32 %v1320_v45, %v1195_v8  ;;  %v1315_v48 = vadd.f32 %v1314_v46, %v1241_v43 }
 0x986   :  { %v1326_v49 = vmax.f32 %v1324_v47, 0.0  ;;  %v1323_v50 = vadd.f32 %v1315_v48, %v1832_v3 }
 0x988   :  { %1328 = vst.msk [vmem:[#allocation2 + $0x8] sm:$0xff] %vm24_vm0, %v1326_v49  ;;  %v1325_v51 = vmax.f32 %v1323_v50, 0.0 }
 0x98a   :  { %1327 = vst.msk [vmem:[#allocation2] sm:$0xff] %vm24_vm0, %v1325_v51 }
 0x98b   :  { %1602 = shalt.err (!%p1599_p4)
}
 0x98c   :  { %s1616_s25 = smov 128   ;;  %s1617_s26 = smov 8  }
 0x98d   :  { %1340 = dma.vmem_to_hbm [thread:$0]  %s1335_s23, 256, %s1871_s5, [#allocation3], %s1616_s25, %s1616_s25, %s1617_s26  }
 0x98e   :  { %1611 = dma.done.wait [#allocation3], 256  }
 0x98f   :  { %1612 = vsyncadd [#allocation3], 4294967040 }
 0x990   :  { %1344 = vsyncpa [#allocation3], 1 }

</bundles_post_ra>
